<compile_context>
chip_gen: v7x
topology: tpu7x:2x2x1
jax: 0.10.0
libtpu: 0.0.40
codegen_flags: <defaults>
</compile_context>

<pallas_src>
import functools

import jax
import jax.numpy as jnp
from jax.experimental import pallas as pl
from jax.experimental.pallas import tpu as pltpu


def _inception_kernel(x_ref, w_ref, b_ref, o_ref):
    # x_ref: (1, 1, C, TL+4) bf16   -- one overlapped window (halo = 2 each side)
    # w_ref: (5, C, C)       bf16   -- fused effective 5-tap weights
    # b_ref: (C, 1)          f32    -- fused bias
    # o_ref: (1, C, TL)      f32
    TL = o_ref.shape[2]
    xp = x_ref[0, 0]                                   # (C, TL+4) bf16

    # 5 accumulating MXU matmuls over shifted views (f32 accumulation).
    acc = jnp.dot(w_ref[0], xp[:, 0:TL], preferred_element_type=jnp.float32)
    for t in range(1, 5):
        acc = acc + jnp.dot(w_ref[t], xp[:, t:t + TL],
                            preferred_element_type=jnp.float32)

    # fused bias (includes adjust bias + branch biases) + ReLU, all in f32.
    o_ref[0] = jnp.maximum(acc + b_ref[...], 0.0).astype(o_ref.dtype)


def inception_block(x, params, tl=None):
    """x: (N, C, L) float32; params: PyTorch-shaped Conv1d weights/biases."""
    w1, b1, w3, b3, w5, b5, wadj, badj = params
    N, C, L = x.shape

    # ---------------- wrapper-side algebraic fusion (plain JAX glue) ----------
    wadj2 = wadj[:, :, 0]                               # (C, 4C)
    a1 = wadj2[:, 0 * C:1 * C]
    a3 = wadj2[:, 1 * C:2 * C]
    a5 = wadj2[:, 2 * C:3 * C]
    ap = wadj2[:, 3 * C:4 * C]
    w1m = w1[:, :, 0]                                   # (C, C)
    eye = jnp.eye(C, dtype=jnp.float32)

    taps = []
    for t in range(5):                                  # tap t multiplies x[l + t - 2]
        wt = a5 @ w5[:, :, t]                           # conv1x5 (pad 2)
        if 1 <= t <= 3:
            wt = wt + a3 @ w3[:, :, t - 1]              # conv1x3 (pad 1)
            wt = wt + ap * (1.0 / 3.0)                  # avgpool(3, pad 1)
        if t == 2:
            wt = wt + a1 @ w1m + eye                    # conv1x1 + residual
        taps.append(wt)
    w_eff = jnp.stack(taps).astype(jnp.bfloat16)        # (5, C, C) bf16
    b_eff = (a1 @ b1 + a3 @ b3 + a5 @ b5 + badj).reshape(C, 1)  # (C, 1) f32

    # ---------------- L tiling with 4-column halo ------------------------------
    if tl is None:
        tl = L if L <= 512 else 512                     # lane-multiple for big L
    nt = -(-L // tl)
    Lp = nt * tl

    xb = x.astype(jnp.bfloat16)                         # halve HBM->VMEM bytes
    x_pad = jnp.pad(xb, ((0, 0), (0, 0), (2, 2 + (Lp - L))))   # (N, C, Lp+4)
    idx = (jnp.arange(nt) * tl)[:, None] + jnp.arange(tl + 4)[None, :]
    x_win = x_pad[:, :, idx]                            # (N, C, nt, tl+4)
    x_win = jnp.transpose(x_win, (0, 2, 1, 3))          # (N, nt, C, tl+4)

    out = pl.pallas_call(
        _inception_kernel,
        out_shape=jax.ShapeDtypeStruct((N, C, Lp), x.dtype),
        grid=(N, nt),
        in_specs=[
            pl.BlockSpec((1, 1, C, tl + 4), lambda n, j: (n, j, 0, 0)),
            pl.BlockSpec((5, C, C), lambda n, j: (0, 0, 0)),
            pl.BlockSpec((C, 1), lambda n, j: (0, 0)),
        ],
        out_specs=pl.BlockSpec((1, C, tl), lambda n, j: (n, 0, j)),
        compiler_params=pltpu.CompilerParams(
            dimension_semantics=("parallel", "parallel"),
            vmem_limit_bytes=32 * 1024 * 1024),
    )(x_win, w_eff, b_eff)

    return out[:, :, :L] if Lp != L else out


def _reference_forward(x, params):
    """Pure-JAX f32 reference mirroring the PyTorch module (for verification)."""
    w1, b1, w3, b3, w5, b5, wadj, badj = params
    N, C, L = x.shape
    dn = jax.lax.conv_dimension_numbers(x.shape, w1.shape,
                                        ('NCH', 'OIH', 'NCH'))
    conv = functools.partial(jax.lax.conv_general_dilated,
                             window_strides=(1,), dimension_numbers=dn)
    c1 = conv(x, w1, padding=[(0, 0)]) + b1[None, :, None]
    c3 = conv(x, w3, padding=[(1, 1)]) + b3[None, :, None]
    c5 = conv(x, w5, padding=[(2, 2)]) + b5[None, :, None]
    xp = jnp.pad(x, ((0, 0), (0, 0), (1, 1)))
    pool = (xp[:, :, 0:L] + xp[:, :, 1:L + 1] + xp[:, :, 2:L + 2]) / 3.0
    cat = jnp.concatenate([c1, c3, c5, pool], axis=1)
    adj = conv(cat, wadj, padding=[(0, 0)]) + badj[None, :, None]
    return jnp.maximum(adj + x, 0.0)


def _make_params(key, C):
    ks = jax.random.split(key, 8)
    s = 0.1
    w1 = jax.random.normal(ks[0], (C, C, 1), jnp.float32) * s
    b1 = jax.random.normal(ks[1], (C,), jnp.float32) * s
    w3 = jax.random.normal(ks[2], (C, C, 3), jnp.float32) * s
    b3 = jax.random.normal(ks[3], (C,), jnp.float32) * s
    w5 = jax.random.normal(ks[4], (C, C, 5), jnp.float32) * s
    b5 = jax.random.normal(ks[5], (C,), jnp.float32) * s
    wadj = jax.random.normal(ks[6], (C, 4 * C, 1), jnp.float32) * s
    badj = jax.random.normal(ks[7], (C,), jnp.float32) * s
    return (w1, b1, w3, b3, w5, b5, wadj, badj)


if __name__ == "__main__":
    key = jax.random.PRNGKey(0)
    kx, kp = jax.random.split(key)
    N, C, L = 2, 4, 16
    x = jax.random.normal(kx, (N, C, L), jnp.float32)
    params = _make_params(kp, C)

    out = inception_block(x, params)
    out = jax.block_until_ready(out)

    ref = _reference_forward(x, params)
    assert out.shape == (N, C, L)
    # bf16 MXU feeds -> relaxed tolerance vs. the f32 reference.
    assert jnp.allclose(out, ref, atol=5e-2, rtol=5e-2), (
        f"max err {jnp.max(jnp.abs(out - ref))}")
    print("KERNEL_OK")
</pallas_src>

<mosaic_0001>
module attributes {stable_mosaic.version = 11 : i64} {
  func.func @_inception_kernel(%arg0: i32, %arg1: i32, %arg2: memref<1x1x4x20xbf16, #tpu.memory_space<vmem>>, %arg3: memref<5x4x4xbf16, #tpu.memory_space<vmem>>, %arg4: memref<4x1xf32, #tpu.memory_space<vmem>>, %arg5: memref<1x4x16xf32, #tpu.memory_space<vmem>>) attributes {dimension_semantics = [#tpu.dimension_semantics<parallel>, #tpu.dimension_semantics<parallel>], iteration_bounds = array<i64: 2, 1>, scalar_prefetch = 0 : i64, scratch_operands = 0 : i64, tpu.core_type = #tpu.core_type<tc>, window_params = [{transform_indices = @transform_0, window_bounds = array<i64: 1, 1, 4, 20>}, {pipeline_mode = #tpu.pipeline_mode<synchronous>, transform_indices = @transform_1, window_bounds = array<i64: 5, 4, 4>}, {pipeline_mode = #tpu.pipeline_mode<synchronous>, transform_indices = @transform_2, window_bounds = array<i64: 4, 1>}, {transform_indices = @transform_3, window_bounds = array<i64: 1, 4, 16>}]} {
    %c0 = arith.constant 0 : index
    %c0_0 = arith.constant 0 : index
    %c0_1 = arith.constant 0 : index
    %c0_2 = arith.constant 0 : index
    %0 = vector.load %arg2[%c0, %c0_0, %c0_1, %c0_2] : memref<1x1x4x20xbf16, #tpu.memory_space<vmem>>, vector<1x1x4x20xbf16>
    %1 = vector.shape_cast %0 : vector<1x1x4x20xbf16> to vector<4x20xbf16>
    %c0_3 = arith.constant 0 : index
    %c0_4 = arith.constant 0 : index
    %c0_5 = arith.constant 0 : index
    %2 = vector.load %arg3[%c0_3, %c0_4, %c0_5] : memref<5x4x4xbf16, #tpu.memory_space<vmem>>, vector<1x4x4xbf16>
    %3 = vector.shape_cast %2 : vector<1x4x4xbf16> to vector<4x4xbf16>
    %4 = vector.extract_strided_slice %1 {offsets = [0, 0], sizes = [4, 16], strides = [1, 1]} : vector<4x20xbf16> to vector<4x16xbf16>
    %cst = arith.constant dense<0.000000e+00> : vector<4x16xf32>
    %5 = tpu.matmul %3, %4, %cst {dimension_numbers = #tpu.dot_dimension_numbers<[1], [0], [0], [1], [0, 0, 1, 1], [], []>} : vector<4x4xbf16>, vector<4x16xbf16>, vector<4x16xf32> -> vector<4x16xf32>
    %c1 = arith.constant 1 : index
    %c0_6 = arith.constant 0 : index
    %c0_7 = arith.constant 0 : index
    %6 = vector.load %arg3[%c1, %c0_6, %c0_7] : memref<5x4x4xbf16, #tpu.memory_space<vmem>>, vector<1x4x4xbf16>
    %7 = vector.shape_cast %6 : vector<1x4x4xbf16> to vector<4x4xbf16>
    %8 = vector.extract_strided_slice %1 {offsets = [0, 1], sizes = [4, 16], strides = [1, 1]} : vector<4x20xbf16> to vector<4x16xbf16>
    %cst_8 = arith.constant dense<0.000000e+00> : vector<4x16xf32>
    %9 = tpu.matmul %7, %8, %cst_8 {dimension_numbers = #tpu.dot_dimension_numbers<[1], [0], [0], [1], [0, 0, 1, 1], [], []>} : vector<4x4xbf16>, vector<4x16xbf16>, vector<4x16xf32> -> vector<4x16xf32>
    %10 = arith.addf %5, %9 : vector<4x16xf32>
    %c2 = arith.constant 2 : index
    %c0_9 = arith.constant 0 : index
    %c0_10 = arith.constant 0 : index
    %11 = vector.load %arg3[%c2, %c0_9, %c0_10] : memref<5x4x4xbf16, #tpu.memory_space<vmem>>, vector<1x4x4xbf16>
    %12 = vector.shape_cast %11 : vector<1x4x4xbf16> to vector<4x4xbf16>
    %13 = vector.extract_strided_slice %1 {offsets = [0, 2], sizes = [4, 16], strides = [1, 1]} : vector<4x20xbf16> to vector<4x16xbf16>
    %cst_11 = arith.constant dense<0.000000e+00> : vector<4x16xf32>
    %14 = tpu.matmul %12, %13, %cst_11 {dimension_numbers = #tpu.dot_dimension_numbers<[1], [0], [0], [1], [0, 0, 1, 1], [], []>} : vector<4x4xbf16>, vector<4x16xbf16>, vector<4x16xf32> -> vector<4x16xf32>
    %15 = arith.addf %10, %14 : vector<4x16xf32>
    %c3 = arith.constant 3 : index
    %c0_12 = arith.constant 0 : index
    %c0_13 = arith.constant 0 : index
    %16 = vector.load %arg3[%c3, %c0_12, %c0_13] : memref<5x4x4xbf16, #tpu.memory_space<vmem>>, vector<1x4x4xbf16>
    %17 = vector.shape_cast %16 : vector<1x4x4xbf16> to vector<4x4xbf16>
    %18 = vector.extract_strided_slice %1 {offsets = [0, 3], sizes = [4, 16], strides = [1, 1]} : vector<4x20xbf16> to vector<4x16xbf16>
    %cst_14 = arith.constant dense<0.000000e+00> : vector<4x16xf32>
    %19 = tpu.matmul %17, %18, %cst_14 {dimension_numbers = #tpu.dot_dimension_numbers<[1], [0], [0], [1], [0, 0, 1, 1], [], []>} : vector<4x4xbf16>, vector<4x16xbf16>, vector<4x16xf32> -> vector<4x16xf32>
    %20 = arith.addf %15, %19 : vector<4x16xf32>
    %c4 = arith.constant 4 : index
    %c0_15 = arith.constant 0 : index
    %c0_16 = arith.constant 0 : index
    %21 = vector.load %arg3[%c4, %c0_15, %c0_16] : memref<5x4x4xbf16, #tpu.memory_space<vmem>>, vector<1x4x4xbf16>
    %22 = vector.shape_cast %21 : vector<1x4x4xbf16> to vector<4x4xbf16>
    %23 = vector.extract_strided_slice %1 {offsets = [0, 4], sizes = [4, 16], strides = [1, 1]} : vector<4x20xbf16> to vector<4x16xbf16>
    %cst_17 = arith.constant dense<0.000000e+00> : vector<4x16xf32>
    %24 = tpu.matmul %22, %23, %cst_17 {dimension_numbers = #tpu.dot_dimension_numbers<[1], [0], [0], [1], [0, 0, 1, 1], [], []>} : vector<4x4xbf16>, vector<4x16xbf16>, vector<4x16xf32> -> vector<4x16xf32>
    %25 = arith.addf %20, %24 : vector<4x16xf32>
    %c0_18 = arith.constant 0 : index
    %c0_19 = arith.constant 0 : index
    %26 = vector.load %arg4[%c0_18, %c0_19] : memref<4x1xf32, #tpu.memory_space<vmem>>, vector<4x1xf32>
    %27 = vector.broadcast %26 : vector<4x1xf32> to vector<4x16xf32>
    %28 = arith.addf %25, %27 : vector<4x16xf32>
    %cst_20 = arith.constant 0.000000e+00 : f32
    %29 = vector.broadcast %cst_20 : f32 to vector<4x16xf32>
    %30 = arith.maximumf %28, %29 : vector<4x16xf32>
    %c0_21 = arith.constant 0 : index
    %c0_22 = arith.constant 0 : index
    %c0_23 = arith.constant 0 : index
    %31 = vector.load %arg5[%c0_21, %c0_22, %c0_23] : memref<1x4x16xf32, #tpu.memory_space<vmem>>, vector<1x4x16xf32>
    %32 = vector.shape_cast %31 : vector<1x4x16xf32> to vector<4x16xf32>
    %33 = vector.shape_cast %30 : vector<4x16xf32> to vector<1x4x16xf32>
    tpu.vector_store %arg5[%c0_21, %c0_22, %c0_23], %33 {strides = array<i32>} : memref<1x4x16xf32, #tpu.memory_space<vmem>>, vector<1x4x16xf32>,
    return
  }
  func.func @transform_0(%arg0: i32, %arg1: i32) -> (i32, i32, i32, i32) {
    %c0_i32 = arith.constant 0 : i32
    %c0_i32_0 = arith.constant 0 : i32
    %c0_i32_1 = arith.constant 0 : i32
    return %arg0, %arg1, %c0_i32, %c0_i32_0 : i32, i32, i32, i32
  }
  func.func @transform_1(%arg0: i32, %arg1: i32) -> (i32, i32, i32) {
    %c0_i32 = arith.constant 0 : i32
    %c0_i32_0 = arith.constant 0 : i32
    %c0_i32_1 = arith.constant 0 : i32
    %c0_i32_2 = arith.constant 0 : i32
    return %c0_i32, %c0_i32_0, %c0_i32_1 : i32, i32, i32
  }
  func.func @transform_2(%arg0: i32, %arg1: i32) -> (i32, i32) {
    %c0_i32 = arith.constant 0 : i32
    %c0_i32_0 = arith.constant 0 : i32
    %c0_i32_1 = arith.constant 0 : i32
    return %c0_i32, %c0_i32_0 : i32, i32
  }
  func.func @transform_3(%arg0: i32, %arg1: i32) -> (i32, i32, i32) {
    %c0_i32 = arith.constant 0 : i32
    %c0_i32_0 = arith.constant 0 : i32
    return %arg0, %c0_i32, %arg1 : i32, i32, i32
  }
}

</mosaic_0001>

<bundles_post_ra>
// kernel: tpu_custom_call.1
= control target key start
LH: loop header
LB: loop body
LE: loop exit
PB: predicated region body
PF: predicated region fallthrough
CT: control target
= control target key end

     0   :  { %8 = vsyncpa [#allocation3], 0  ;;  %s927_s0 = inlined_call_operand.vmem [shape: bf16[2,1,4,20], index: 0, kind: input, shape index: {}]   ;;  %s928_s1 = inlined_call_operand.vmem [shape: bf16[5,4,4], index: 1, kind: input, shape index: {}]   ;;  %s929_s2 = inlined_call_operand.vmem [shape: f32[4,1], index: 2, kind: input, shape index: {}]   ;;  %s930_s3 = inlined_call_operand.hbm [shape: f32[2,4,16], index: 3, kind: output, shape index: {}]  }
   0x1   :  { %10 = vsyncpa [#allocation3 + $0x1], 0  ;;  %s782_s12 = smov 0   ;;  %s784_s13 = smov 0  }
   0x2   :  { %s786_s14 = smov 0   ;;  %s788_s15 = smov 0  }
   0x3   :  { %s790_s16 = smov 0   ;;  %s792_s17 = smov 0  }
   0x4 LB: > { %s549_s18 = sadd.s32 4294967295, %s751_s17   ;;  %s550_s19 = sadd.s32 4294967294, %s751_s17   ;;  %s751_s17 = sphi %s792_s17, %s16_s17   ;;  %s747_s16 = sphi %s790_s16, %s937_s16   ;;  %s743_s15 = sphi %s788_s15, %s936_s15   ;;  %s739_s14 = sphi %s786_s14, %s935_s14   ;;  %s735_s13 = sphi %s784_s13, %s934_s13   ;;  %s731_s12 = sphi %s782_s12, %s933_s12  }
   0x5   : > { %s28_s20 = sadd.s32 1, %s747_s16  ;;  %s107_s21 = sadd.s32 1, %s739_s14 }
   0x6   : > { %p30_p0 = scmp.ge.s32.totalorder %s28_s20, 2  ;;  %p117_p1 = scmp.ne.s32.totalorder %s739_s14, %s735_s13 }
   0x7   : > { %p118_p2 = scmp.eq.s32.totalorder %s549_s18, 1  ;;  %p123_p3 = scmp.ne.s32.totalorder %s735_s13, %s731_s12 }
   0x8   : > { %s939_s20 = smov (%p30_p0, %s28_s20), 0  ;;  %p124_p5 = scmp.eq.s32.totalorder %s550_s19, 1 }
   0x9   : > { %p822_p4 = por %p118_p2, %p117_p1  ;;  %s102_s23 = ssub.s32 %s747_s16, %s939_s20 }
   0xa   : > { %p553_p6 = scmp.ge.s32.totalorder %s751_s17, 1  ;;  %p105_p7 = scmp.eq.s32.totalorder %s102_s23, 0 }
   0xb   : > { %p829_p8 = por %p124_p5, %p123_p3  ;;  %p158_p9 = scmp.lt.s32.totalorder %s751_s17, 3 }
   0xc   : > { %s835_s25 = scalar_select %p105_p7, %s739_s14, %s107_s21  }
   0xd   : > { %p159_p10 = pnand %p553_p6, %p158_p9 }
   0xe   : > { %p184_p11 = scmp.lt.s32.totalorder (!%p159_p10), %s743_s15, 1  ;;  %v200_v0 = vlaneseq (!%p159_p10)  ;;  %v753_v1 = vmov (!%p159_p10), 1983009808   ;;  %v754_v3 = vmov (!%p159_p10), 0.0   ;;  %vm755_vm0 = vmmov (!%p159_p10), 0   ;;  %s756_s6 = smov (!%p159_p10), 127  }
   0xf   : > { %162 = sbr.rel (%p159_p10) target bundleno = 396 (0x18c), region = 32  ;;  %v198_v2 = vunpack.c.l.s4 (!%p159_p10), %v753_v1  ;;  %579 = vmatprep.subr.bf16.mxu0 (!%p159_p10), %v754_v3  ;;  %585 = vmatprep.subr.bf16.mxu1 (!%p159_p10), %v754_v3  ;;  %vm210_vm1 = vcmask (!%p159_p10), 1041408   ;;  %vm206_vm2 = vcmask (!%p159_p10), 31744   ;;  %v193_v10 = vld [vmem:[%s928_s1] sm:$0x3] (!%p159_p10)  ;;  %s757_s7 = smov (!%p159_p10), 125  }
  0x10   : > { %v201_v4 = vshrl.u32 (!%p159_p10), %v200_v0, 7  ;;  %581 = vmatprep.mubr.msk.bf16.mxu0 (!%p159_p10), %vm755_vm0, %v754_v3  ;;  %587 = vmatprep.mubr.msk.bf16.mxu1 (!%p159_p10), %vm755_vm0, %v754_v3  ;;  %s758_s8 = smov (!%p159_p10), 126   ;;  %s759_s9 = smov (!%p159_p10), 124   ;;  %v453_v11 = vld [vmem:[%s929_s2] sm:$0xf] (!%p159_p10)  ;;  %v760_v12 = vmov (!%p159_p10), 0  }
  0x11   : > { %v199_v5 = vunpack.c.0.s8 (!%p159_p10), %v198_v2  ;;  %672 = vset.pattern.permute.xlu0 (!%p159_p10), %v760_v12  ;;  %v556_v17 = vld [vmem:[%s928_s1 + $0x2] sm:$0x3] (!%p159_p10)  ;;  %v561_v18 = vld [vmem:[%s928_s1 + $0x6] sm:$0x3] (!%p159_p10)  ;;  %v559_v22 = vld [vmem:[%s928_s1 + $0x4] sm:$0x3] (!%p159_p10) }
  0x12   : > { %v563_v24 = vld [vmem:[%s928_s1 + $0x8] sm:$0x3] (!%p159_p10)  ;;  %s566_s5 = sshll.u32 (!%p159_p10), %s743_s15, 6  ;;  %vm461_vm3 = vcmask (!%p159_p10), 125952  }
  0x13   : > { %v202_v6 = vsub.s32 (!%p159_p10), %v199_v5, %v201_v4  ;;  %s880_s10 = scalar_lea.hbm (!%p159_p10), %s930_s3, %s566_s5 }
  0x16   : > { %s185_s26 = scalar_select %p184_p11, %s743_s15, 1 }
  0x17   : > { %s761_s15 = smov [#allocation2]  }
  0x18   : > { %s555_s27 = sshll.u32 %s185_s26, 1  ;;  %s677_s19 = sshll.u32 %s761_s15, 4  ;;  %s678_s19 = int_to_ptr.vmem [resolvable:$false] %s677_s19 }
  0x19   : > { %s190_s30 = scalar_lea.vmem %s927_s0, %s555_s27  ;;  %s679_s21 = scalar_lea.vmem %s678_s19, 128 }
  0x1a   : > { %v192_v7 = vld [vmem:[%s190_s30] sm:$0x3]  ;;  %s181_s30 = sand.u32 1, %s735_s13  }
  0x1b   : > { %v203_v8 = vrot.slane %v192_v7, %v202_v6  ;;  %v258_v9 = vsel %vm210_vm1, %v192_v7, 0  ;;  %s554_s4 = sshll.u32 %s181_s30, 2  ;;  %s464_s11 = scalar_lea.sflag [#allocation3], %s181_s30 }
  0x1c   : > { %586 = vmatpush3.bf16.msra.mxu1 %v258_v9 }
  0x1d   : > { %204 = vrot.lane.b32.xlu0 %v203_v8, %s756_s6  ;;  %353 = vrot.lane.b32.xlu1 %v203_v8, %s757_s7  ;;  %s183_s6 = scalar_lea.vmem [#allocation2], %s554_s4 }
  0x1e   : > { %597 = vmatprep.subr.bf16.mxu1 %v754_v3  ;;  %s478_s7 = sshll.u32 %s183_s6, 4  ;;  %s882_s7 = int_to_ptr.vmem [resolvable:$true] %s478_s7 }
  0x1f   : > { %588 = vmatmul.mubr.msk.bf16.vlgmr.msra.gmra.mrb[0].mxu1 %vm206_vm2, %v193_v10  ;;  %s673_s18 = scalar_lea.vmem %s882_s7, 64  ;;  %p680_p1 = scmp.lt.s32.totalorder %s882_s7, %s678_s19 }
  0x20   : > { %599 = vmatprep.mubr.msk.bf16.mxu1 %vm755_vm0, %v754_v3  ;;  %p674_p12 = scmp.ne.s32.totalorder %s882_s7, %s673_s18  ;;  %p681_p2 = scmp.lt.s32.totalorder %s679_s21, %s673_s18 }
  0x21   : > { %302 = vrot.lane.b32.xlu0 %v203_v8, %s758_s8  ;;  %404 = vrot.lane.b32.xlu1 %v203_v8, %s759_s9 }
  0x22   : > { %p675_p13 = pnand %p674_p12, %p822_p4  ;;  %p682_p3 = por %p681_p2, %p680_p1 }
  0x24   : > { %p676_p0 = pneg %p675_p13 }
  0x25   : > { %456 = vperm.xlu0 %672, %v453_v11  }
  0x26   : > { %p683_p5 = pnand %p682_p3, %p676_p0 }
  0x8f   : > { %v205_v13 = vpop.permute.xlu0 %204  ;;  %v354_v14 = vpop.permute.xlu1 %353 }
  0x90   : > { %v212_v15 = vsel %vm210_vm1, %v205_v13, 0  ;;  %v359_v16 = vsel %vm210_vm1, %v354_v14, 0 }
  0x91   : > { %580 = vmatpush3.bf16.msra.mxu0 %v212_v15  ;;  %598 = vmatpush3.bf16.msra.mxu1 %v359_v16 }
  0x92   : > { %591 = vmatprep.subr.bf16.mxu0 %v754_v3 }
  0x93   : > { %v303_v19 = vpop.permute.xlu0 %302  ;;  %v405_v21 = vpop.permute.xlu1 %404 }
  0x94   : > { %v308_v20 = vsel %vm210_vm1, %v303_v19, 0  ;;  %582 = vmatmul.mubr.msk.bf16.vlgmr.msra.gmra.mrb[0].mxu0 %vm206_vm2, %v556_v17  ;;  %600 = vmatmul.mubr.msk.bf16.vlgmr.msra.gmra.mrb[4].mxu1 %vm206_vm2, %v561_v18  ;;  %v410_v23 = vsel %vm210_vm1, %v405_v21, 0 }
  0x95   : > { %592 = vmatpush3.bf16.msra.mxu0 %v308_v20  ;;  %593 = vmatprep.mubr.msk.bf16.mxu0 %vm755_vm0, %v754_v3 }
  0x96   : > { %603 = vmatprep.subr.bf16.mxu0 %v754_v3 }
  0x9c   : > { %594 = vmatmul.mubr.msk.bf16.vlgmr.msra.gmra.mrb[4].mxu0 %vm206_vm2, %v559_v22 }
  0x9d   : > { %604 = vmatpush3.bf16.msra.mxu0 %v410_v23  ;;  %605 = vmatprep.mubr.msk.bf16.mxu0 %vm755_vm0, %v754_v3 }
  0xa4   : > { %606 = vmatmul.mubr.msk.bf16.vlgmr.msra.gmra.mrb[8].mxu0 %vm206_vm2, %v563_v24  ;;  %v457_v45 = vpop.permute.xlu0 %456 }
  0xf2   : > { %v294_v25 = vpop.f32.mrb[0].mxu1 }
  0xf3   : > { %v589_v26 = vpop.f32.mrb[1].mxu1 }
  0xf4   : > { %v297_v27 = vpop.f32.mrb[2].mxu1 }
  0xf5   : > { %v590_v28 = vpop.f32.mrb[3].mxu1 }
 0x167   : > { %v248_v29 = vpop.f32.mrb[0].mxu0  ;;  %v395_v30 = vpop.f32.mrb[4].mxu1 }
 0x168   : > { %v583_v31 = vpop.f32.mrb[1].mxu0  ;;  %v295_v32 = vadd.f32 %v294_v25, %v248_v29  ;;  %v601_v33 = vpop.f32.mrb[5].mxu1 }
 0x169   : > { %v251_v34 = vpop.f32.mrb[2].mxu0  ;;  %v398_v35 = vpop.f32.mrb[6].mxu1 }
 0x16a   : > { %v584_v36 = vpop.f32.mrb[3].mxu0  ;;  %v602_v37 = vpop.f32.mrb[7].mxu1 }
 0x16f   : > { %v344_v38 = vpop.f32.mrb[4].mxu0 }
 0x170   : > { %v350_v39 = vadd.f32 %v344_v38, %v295_v32  ;;  %v595_v40 = vpop.f32.mrb[5].mxu0 }
 0x171   : > { %v347_v41 = vpop.f32.mrb[6].mxu0 }
 0x172   : > { %v401_v42 = vadd.f32 %v395_v30, %v350_v39  ;;  %v596_v43 = vpop.f32.mrb[7].mxu0 }
 0x177   : > { %v446_v44 = vpop.f32.mrb[8].mxu0 }
 0x178   : > { %v452_v46 = vadd.f32 %v446_v44, %v401_v42  ;;  %v607_v47 = vpop.f32.mrb[9].mxu0 }
 0x179   : > { %v449_v48 = vpop.f32.mrb[10].mxu0 }
 0x17a   : > { %v459_v49 = vadd.f32 %v457_v45, %v452_v46  ;;  %v608_v50 = vpop.f32.mrb[11].mxu0 }
 0x17c   : > { %v460_v51 = vmax.f32 %v459_v49, 0.0 }
 0x17e   : > { %462 = vst.msk [vmem:[%s183_s6] sm:$0xf] %vm461_vm3, %v460_v51 }
 0x17f   : > { %686 = shalt.err (!%p683_p5)
}
 0x180   : > { %s687_s23 = scalar_lea.hbm %s880_s10, 64  ;;  %s691_s28 = scalar_lea.hbm %s930_s3, 128 }
 0x181   : > { %p688_p6 = scmp.ne.s32.totalorder %s880_s10, %s687_s23  ;;  %p692_p10 = scmp.lt.u32.totalorder %s880_s10, %s930_s3 }
 0x182   : > { %p693_p11 = scmp.lt.u32.totalorder %s691_s28, %s687_s23  ;;  %p695_p13 = scmp.lt.u32.totalorder %s687_s23, %s880_s10 }
 0x183   : > { %p689_p7 = pnand %p688_p6, %p822_p4 }
 0x184   : > { %p694_p12 = por %p693_p11, %p692_p10 }
 0x185   : > { %p690_p9 = pneg %p689_p7 }
 0x186   : > { %p696_p0 = por %p695_p13, %p694_p12 }
 0x188   : > { %p697_p1 = pnand %p696_p0, %p690_p9 }
 0x18a   : > { %700 = shalt.err (!%p697_p1)
}
 0x18b   : > { %609 = dma.vmem_to_hbm [thread:$0]  (%p822_p4), %s882_s7, 64, %s880_s10, %s464_s11  }
 0x18c PF: > { %p615_p2 = scmp.ge.s32.totalorder %s751_s17, 2  ;;  %s490_s4 = sand.u32 1, %s731_s12  }
 0x18d   : > { %s491_s5 = scalar_lea.sflag [#allocation3], %s490_s4 }
 0x18e   : > { %p612_p3 = pnand %p615_p2, %p829_p8 }
 0x190   : > { %726 = dma.done.wait (!%p612_p3), %s491_s5, 64  }
 0x191   : > { %728 = vsyncadd (!%p612_p3), %s491_s5, 4294967232  ;;  %s16_s17 = sadd.s32 1, %s751_s17   ;;  %s933_s12 = smov %s735_s13 }
 0x192   : > { %p13_p5 = scmp.ge.s32.totalorder %s16_s17, 4   ;;  %s934_s13 = smov %s739_s14 }
 0x193   : > { %s935_s14 = smov %s835_s25  ;;  %s936_s15 = smov %s747_s16 }
 0x194   : > { %s937_s16 = smov %s939_s20  ;;  %15 = sbr.rel (!%p13_p5) target bundleno = 4 (0x4), region = 71 }
 0x19b   :  { %496 = vsyncpa [#allocation3], 1 }
 0x19c   :  { %498 = vsyncpa [#allocation3 + $0x1], 1 }

</bundles_post_ra>
